<compile_context>
chip_gen: v7x
topology: tpu7x:2x2x1
jax: 0.10.0
libtpu: 0.0.40
codegen_flags: <defaults>
</compile_context>

<pallas_src>
import functools

import jax
import jax.numpy as jnp
from jax import lax
from jax.experimental import pallas as pl
from jax.experimental.pallas import tpu as pltpu


def _round_up(x, m):
    return ((x + m - 1) // m) * m


def _label_smoothing_kernel(out_ref, lab_ref, ce_sum_ref, ls_sum_ref, *,
                            ita, num_valid, tb, n_inner):
    """Accumulate per-super-chunk partial sums of CE and sum_c log(p + ita)."""
    o = pl.program_id(0)   # batch super-chunk ('parallel' -> one per TensorCore on v7x)
    i = pl.program_id(1)   # inner batch chunk ('arbitrary' -> carries the accumulation)

    @pl.when(i == 0)
    def _init():
        ce_sum_ref[...] = jnp.zeros_like(ce_sum_ref)
        ls_sum_ref[...] = jnp.zeros_like(ls_sum_ref)

    x = out_ref[...].astype(jnp.float32)                         # [tb, c]
    c = x.shape[1]

    # Logical rows covered by this grid step.  There is no wrapper-side padding:
    # the tail block (and the clamped duplicate block, if any) may contain
    # garbage, so mask BEFORE the transcendentals.
    chunk = o * n_inner + i
    row = chunk * tb + lax.broadcasted_iota(jnp.int32, (tb, 1), 0)   # [tb, 1]
    valid = row < num_valid                                          # [tb, 1] bool
    x = jnp.where(valid, x, 0.0)

    # Numerically-stable softmax pieces: one full-tile exp, one per-row log.
    m = jnp.max(x, axis=1, keepdims=True)                        # [tb, 1]
    e = jnp.exp(x - m)                                           # [tb, c]  (EUP)
    s = jnp.sum(e, axis=1, keepdims=True)                        # [tb, 1]
    log_s = jnp.log(s)                                           # [tb, 1]

    # Cross-entropy at the label: -log p[b, label] = (m + log s) - x[label]
    labels = lab_ref[...]                                        # [tb, 1] int32
    col = lax.broadcasted_iota(jnp.int32, x.shape, 1)            # [tb, c]
    x_lab = jnp.sum(jnp.where(col == labels, x, 0.0), axis=1, keepdims=True)
    ce_row = (m + log_s) - x_lab                                 # [tb, 1]

    # Smoothing term: log(p + ita) = log(e + ita*s) - log(s)   (no full-tile divide)
    smooth = jnp.log(e + ita * s)                                # [tb, c]  (EUP)
    ls_row = jnp.sum(smooth, axis=1, keepdims=True) - float(c) * log_s   # [tb, 1]

    validf = valid.astype(jnp.float32)
    ce_sum_ref[...] += jnp.sum(ce_row * validf).reshape(1, 1, 1)
    ls_sum_ref[...] += jnp.sum(ls_row * validf).reshape(1, 1, 1)


def label_smoothing(outputs, labels, *, nc, eps=0.1, ita=1e-10, block_b=None):
    """outputs: [b, c] float (f32 or bf16), labels: [b] int -> (loss_total, ce) scalars."""
    b, c = outputs.shape
    itemsize = jnp.dtype(outputs.dtype).itemsize

    # ---- batch tile sized by bytes (not a fixed row count) -------------------
    if block_b is None:
        target_tile_bytes = 2 << 20          # ~2 MiB of raw input per tile
        tb = max(8, (target_tile_bytes // max(1, c * itemsize)) // 8 * 8)
    else:
        tb = _round_up(max(8, block_b), 8)
    tb = min(tb, _round_up(b, 8))

    n_chunks = (b + tb - 1) // tb
    # Leading 'parallel' axis: both TensorCores on v7x each take half the batch;
    # on v5e/v6e (1 TC) the two super-chunks just run back-to-back (negligible cost).
    n_outer = 2 if n_chunks >= 2 else 1
    n_inner = (n_chunks + n_outer - 1) // n_outer

    labels2d = labels.astype(jnp.int32).reshape(b, 1)

    # Clamp the block index so over-coverage (odd n_chunks / ragged batch) never
    # DMAs out of bounds; the duplicate block is fully masked in-kernel.
    def x_map(o, i):
        return (jnp.minimum(o * n_inner + i, n_chunks - 1), 0)

    def lab_map(o, i):
        return (jnp.minimum(o * n_inner + i, n_chunks - 1), 0)

    kernel = functools.partial(
        _label_smoothing_kernel,
        ita=float(ita), num_valid=b, tb=tb, n_inner=n_inner)

    # ---- generation-aware VMEM budget ----------------------------------------
    try:
        vmem_cap = int(pltpu.get_tpu_info().vmem_capacity_bytes)
    except Exception:
        vmem_cap = 64 << 20                  # conservative (v7x-sized) fallback
    in_tile = tb * c * itemsize
    need = 2 * in_tile + 4 * tb * c * 4 + (2 << 20)   # dbl-buffered input + f32 temps
    vmem_limit = int(min(max(need, 32 << 20), vmem_cap - (16 << 20)))

    cost = pl.CostEstimate(
        flops=int(6 * b * c),
        transcendentals=int(2 * b * c),
        bytes_accessed=int(b * c * itemsize + b * 4 + 8 * n_outer),
    )

    ce_parts, ls_parts = pl.pallas_call(
        kernel,
        out_shape=(
            jax.ShapeDtypeStruct((n_outer, 1, 1), jnp.float32),
            jax.ShapeDtypeStruct((n_outer, 1, 1), jnp.float32),
        ),
        grid_spec=pltpu.PrefetchScalarGridSpec(
            num_scalar_prefetch=0,
            grid=(n_outer, n_inner),
            in_specs=[
                pl.BlockSpec((tb, c), x_map),
                pl.BlockSpec((tb, 1), lab_map),
            ],
            out_specs=[
                pl.BlockSpec((1, 1, 1), lambda o, i: (o, 0, 0)),
                pl.BlockSpec((1, 1, 1), lambda o, i: (o, 0, 0)),
            ],
        ),
        compiler_params=pltpu.CompilerParams(
            dimension_semantics=("parallel", "arbitrary"),
            vmem_limit_bytes=vmem_limit,
        ),
        cost_estimate=cost,
    )(outputs, labels2d)

    # Final scalar combine (tiny) done outside the kernel.
    ce = jnp.sum(ce_parts) / b
    sum_log = jnp.sum(ls_parts) / b
    loss = (1.0 - eps) * ce - (eps / float(nc)) * sum_log
    return loss, ce


def _reference(outputs, labels, *, nc, eps=0.1, ita=1e-10):
    """Pure-JAX reference matching the PyTorch module."""
    p = jax.nn.softmax(outputs.astype(jnp.float32), axis=1)
    logp = jnp.log(p)
    ce = -jnp.mean(logp[jnp.arange(outputs.shape[0]), labels])
    sum_log = jnp.mean(jnp.sum(jnp.log(p + ita), axis=1))
    loss = (1.0 - eps) * ce - eps * sum_log / nc
    return loss, ce


if __name__ == "__main__":
    key = jax.random.PRNGKey(0)
    k1, k2, k3, k4 = jax.random.split(key, 4)

    # Case 1: batch = 2 tiles -> exercises the parallel outer axis + accumulation.
    b1, nc1 = 16, 32
    out1 = jax.random.normal(k1, (b1, nc1), dtype=jnp.float32)
    lab1 = jax.random.randint(k2, (b1,), 0, nc1, dtype=jnp.int32)
    loss1, ce1 = label_smoothing(out1, lab1, nc=nc1, eps=0.1, ita=1e-10, block_b=8)
    jax.block_until_ready((loss1, ce1))
    rl1, rc1 = _reference(out1, lab1, nc=nc1, eps=0.1, ita=1e-10)
    assert jnp.allclose(loss1, rl1, atol=1e-5, rtol=1e-5), (loss1, rl1)
    assert jnp.allclose(ce1, rc1, atol=1e-5, rtol=1e-5), (ce1, rc1)

    # Case 2: ragged batch (not a multiple of the tile) -> exercises in-kernel
    # masking and the clamped duplicate tail chunk (no wrapper-side padding).
    b2, nc2 = 22, 48
    out2 = jax.random.normal(k3, (b2, nc2), dtype=jnp.float32)
    lab2 = jax.random.randint(k4, (b2,), 0, nc2, dtype=jnp.int32)
    loss2, ce2 = label_smoothing(out2, lab2, nc=nc2, eps=0.1, ita=1e-10, block_b=8)
    jax.block_until_ready((loss2, ce2))
    rl2, rc2 = _reference(out2, lab2, nc=nc2, eps=0.1, ita=1e-10)
    assert jnp.allclose(loss2, rl2, atol=1e-5, rtol=1e-5), (loss2, rl2)
    assert jnp.allclose(ce2, rc2, atol=1e-5, rtol=1e-5), (ce2, rc2)

    print("KERNEL_OK")
</pallas_src>

<mosaic_0001>
module attributes {stable_mosaic.version = 11 : i64} {
  func.func @_label_smoothing_kernel(%arg0: i32, %arg1: i32, %arg2: memref<8x32xf32, #tpu.memory_space<vmem>>, %arg3: memref<8x1xi32, #tpu.memory_space<vmem>>, %arg4: memref<1x1x1xf32, #tpu.memory_space<vmem>>, %arg5: memref<1x1x1xf32, #tpu.memory_space<vmem>>) attributes {dimension_semantics = [#tpu.dimension_semantics<parallel>, #tpu.dimension_semantics<arbitrary>], iteration_bounds = array<i64: 2, 1>, scalar_prefetch = 0 : i64, scratch_operands = 0 : i64, tpu.core_type = #tpu.core_type<tc>, window_params = [{transform_indices = @transform_0, window_bounds = array<i64: 8, 32>}, {transform_indices = @transform_1, window_bounds = array<i64: 8, 1>}, {transform_indices = @transform_2, window_bounds = array<i64: 1, 1, 1>}, {transform_indices = @transform_3, window_bounds = array<i64: 1, 1, 1>}]} {
    %c0_i32 = arith.constant 0 : i32
    %0 = arith.cmpi eq, %arg1, %c0_i32 : i32
    %1 = arith.extui %0 : i1 to i32
    %c0_i32_0 = arith.constant 0 : i32
    %2 = arith.cmpi ne, %1, %c0_i32_0 : i32
    scf.if %2 {
      %cst_25 = arith.constant 0.000000e+00 : f32
      %64 = vector.broadcast %cst_25 : f32 to vector<1x1x1xf32>
      %c0_26 = arith.constant 0 : index
      %c0_27 = arith.constant 0 : index
      %c0_28 = arith.constant 0 : index
      %65 = vector.load %arg4[%c0_26, %c0_27, %c0_28] : memref<1x1x1xf32, #tpu.memory_space<vmem>>, vector<1x1x1xf32>
      tpu.vector_store %arg4[%c0_26, %c0_27, %c0_28], %64 {strides = array<i32>} : memref<1x1x1xf32, #tpu.memory_space<vmem>>, vector<1x1x1xf32>,
      %cst_29 = arith.constant 0.000000e+00 : f32
      %66 = vector.broadcast %cst_29 : f32 to vector<1x1x1xf32>
      %c0_30 = arith.constant 0 : index
      %c0_31 = arith.constant 0 : index
      %c0_32 = arith.constant 0 : index
      %67 = vector.load %arg5[%c0_30, %c0_31, %c0_32] : memref<1x1x1xf32, #tpu.memory_space<vmem>>, vector<1x1x1xf32>
      tpu.vector_store %arg5[%c0_30, %c0_31, %c0_32], %66 {strides = array<i32>} : memref<1x1x1xf32, #tpu.memory_space<vmem>>, vector<1x1x1xf32>,
    } else {
    }
    %c0 = arith.constant 0 : index
    %c0_1 = arith.constant 0 : index
    %3 = vector.load %arg2[%c0, %c0_1] : memref<8x32xf32, #tpu.memory_space<vmem>>, vector<8x32xf32>
    %c1_i32 = arith.constant 1 : i32
    %4 = arith.muli %arg0, %c1_i32 : i32
    %5 = arith.addi %4, %arg1 : i32
    %c8_i32 = arith.constant 8 : i32
    %6 = arith.muli %5, %c8_i32 : i32
    %7 = tpu.iota {dimensions = array<i32: 0>} : vector<8x1xi32>
    %8 = vector.broadcast %6 : i32 to vector<8x1xi32>
    %9 = arith.addi %8, %7 : vector<8x1xi32>
    %c16_i32 = arith.constant 16 : i32
    %10 = vector.broadcast %c16_i32 : i32 to vector<8x1xi32>
    %11 = arith.cmpi slt, %9, %10 : vector<8x1xi32>
    %cst = arith.constant 0.000000e+00 : f32
    %12 = vector.shape_cast %11 : vector<8x1xi1> to vector<8x1xi1>
    %13 = vector.broadcast %12 : vector<8x1xi1> to vector<8x32xi1>
    %14 = vector.broadcast %cst : f32 to vector<8x32xf32>
    %15 = arith.select %13, %3, %14 : vector<8x32xi1>, vector<8x32xf32>
    %cst_2 = arith.constant dense<0xFF800000> : vector<8xf32>
    %16 = vector.multi_reduction <maximumf>, %15, %cst_2 [1] : vector<8x32xf32> to vector<8xf32>
    %17 = vector.shape_cast %16 : vector<8xf32> to vector<8x1xf32>
    %18 = vector.broadcast %17 : vector<8x1xf32> to vector<8x32xf32>
    %19 = arith.subf %15, %18 : vector<8x32xf32>
    %20 = math.exp %19 : vector<8x32xf32>
    %cst_3 = arith.constant dense<0.000000e+00> : vector<8xf32>
    %21 = vector.multi_reduction <add>, %20, %cst_3 [1] : vector<8x32xf32> to vector<8xf32>
    %22 = vector.shape_cast %21 : vector<8xf32> to vector<8x1xf32>
    %23 = math.log %22 : vector<8x1xf32>
    %c0_4 = arith.constant 0 : index
    %c0_5 = arith.constant 0 : index
    %24 = vector.load %arg3[%c0_4, %c0_5] : memref<8x1xi32, #tpu.memory_space<vmem>>, vector<8x1xi32>
    %25 = tpu.iota {dimensions = array<i32: 1>} : vector<8x32xi32>
    %26 = vector.broadcast %24 : vector<8x1xi32> to vector<8x32xi32>
    %27 = arith.cmpi eq, %25, %26 : vector<8x32xi32>
    %cst_6 = arith.constant 0.000000e+00 : f32
    %28 = vector.broadcast %cst_6 : f32 to vector<8x32xf32>
    %29 = arith.select %27, %15, %28 : vector<8x32xi1>, vector<8x32xf32>
    %cst_7 = arith.constant dense<0.000000e+00> : vector<8xf32>
    %30 = vector.multi_reduction <add>, %29, %cst_7 [1] : vector<8x32xf32> to vector<8xf32>
    %31 = vector.shape_cast %30 : vector<8xf32> to vector<8x1xf32>
    %32 = arith.addf %17, %23 : vector<8x1xf32>
    %33 = arith.subf %32, %31 : vector<8x1xf32>
    %cst_8 = arith.constant 1.000000e-10 : f32
    %34 = vector.broadcast %cst_8 : f32 to vector<8x1xf32>
    %35 = arith.mulf %34, %22 : vector<8x1xf32>
    %36 = vector.broadcast %35 : vector<8x1xf32> to vector<8x32xf32>
    %37 = arith.addf %20, %36 : vector<8x32xf32>
    %38 = math.log %37 : vector<8x32xf32>
    %cst_9 = arith.constant dense<0.000000e+00> : vector<8xf32>
    %39 = vector.multi_reduction <add>, %38, %cst_9 [1] : vector<8x32xf32> to vector<8xf32>
    %40 = vector.shape_cast %39 : vector<8xf32> to vector<8x1xf32>
    %cst_10 = arith.constant 3.200000e+01 : f32
    %41 = vector.broadcast %cst_10 : f32 to vector<8x1xf32>
    %42 = arith.mulf %41, %23 : vector<8x1xf32>
    %43 = arith.subf %40, %42 : vector<8x1xf32>
    %44 = arith.extui %11 : vector<8x1xi1> to vector<8x1xi32>
    %45 = arith.sitofp %44 : vector<8x1xi32> to vector<8x1xf32>
    %c0_11 = arith.constant 0 : index
    %c0_12 = arith.constant 0 : index
    %c0_13 = arith.constant 0 : index
    %46 = vector.load %arg4[%c0_11, %c0_12, %c0_13] : memref<1x1x1xf32, #tpu.memory_space<vmem>>, vector<1x1x1xf32>
    %47 = arith.mulf %33, %45 : vector<8x1xf32>
    %48 = vector.shape_cast %47 : vector<8x1xf32> to vector<1x8x1xf32>
    %cst_14 = arith.constant dense<0.000000e+00> : vector<1xf32>
    %49 = vector.multi_reduction <add>, %48, %cst_14 [1, 2] : vector<1x8x1xf32> to vector<1xf32>
    %50 = vector.shape_cast %49 : vector<1xf32> to vector<1x1x1xf32>
    %51 = vector.extract %50[0, 0, 0] : f32 from vector<1x1x1xf32>
    %52 = vector.broadcast %51 : f32 to vector<1x1x1xf32>
    %53 = arith.addf %46, %52 : vector<1x1x1xf32>
    %c0_15 = arith.constant 0 : index
    %c0_16 = arith.constant 0 : index
    %c0_17 = arith.constant 0 : index
    %54 = vector.load %arg4[%c0_15, %c0_16, %c0_17] : memref<1x1x1xf32, #tpu.memory_space<vmem>>, vector<1x1x1xf32>
    tpu.vector_store %arg4[%c0_15, %c0_16, %c0_17], %53 {strides = array<i32>} : memref<1x1x1xf32, #tpu.memory_space<vmem>>, vector<1x1x1xf32>,
    %c0_18 = arith.constant 0 : index
    %c0_19 = arith.constant 0 : index
    %c0_20 = arith.constant 0 : index
    %55 = vector.load %arg5[%c0_18, %c0_19, %c0_20] : memref<1x1x1xf32, #tpu.memory_space<vmem>>, vector<1x1x1xf32>
    %56 = arith.mulf %43, %45 : vector<8x1xf32>
    %57 = vector.shape_cast %56 : vector<8x1xf32> to vector<1x8x1xf32>
    %cst_21 = arith.constant dense<0.000000e+00> : vector<1xf32>
    %58 = vector.multi_reduction <add>, %57, %cst_21 [1, 2] : vector<1x8x1xf32> to vector<1xf32>
    %59 = vector.shape_cast %58 : vector<1xf32> to vector<1x1x1xf32>
    %60 = vector.extract %59[0, 0, 0] : f32 from vector<1x1x1xf32>
    %61 = vector.broadcast %60 : f32 to vector<1x1x1xf32>
    %62 = arith.addf %55, %61 : vector<1x1x1xf32>
    %c0_22 = arith.constant 0 : index
    %c0_23 = arith.constant 0 : index
    %c0_24 = arith.constant 0 : index
    %63 = vector.load %arg5[%c0_22, %c0_23, %c0_24] : memref<1x1x1xf32, #tpu.memory_space<vmem>>, vector<1x1x1xf32>
    tpu.vector_store %arg5[%c0_22, %c0_23, %c0_24], %62 {strides = array<i32>} : memref<1x1x1xf32, #tpu.memory_space<vmem>>, vector<1x1x1xf32>,
    return
  }
  func.func @transform_0(%arg0: i32, %arg1: i32) -> (i32, i32) {
    %c1_i32 = arith.constant 1 : i32
    %0 = arith.muli %arg0, %c1_i32 : i32
    %1 = arith.addi %0, %arg1 : i32
    %c1_i32_0 = arith.constant 1 : i32
    %2 = arith.minsi %1, %c1_i32_0 : i32
    %c0_i32 = arith.constant 0 : i32
    %c0_i32_1 = arith.constant 0 : i32
    return %2, %c0_i32 : i32, i32
  }
  func.func @transform_1(%arg0: i32, %arg1: i32) -> (i32, i32) {
    %c1_i32 = arith.constant 1 : i32
    %0 = arith.muli %arg0, %c1_i32 : i32
    %1 = arith.addi %0, %arg1 : i32
    %c1_i32_0 = arith.constant 1 : i32
    %2 = arith.minsi %1, %c1_i32_0 : i32
    %c0_i32 = arith.constant 0 : i32
    %c0_i32_1 = arith.constant 0 : i32
    return %2, %c0_i32 : i32, i32
  }
  func.func @transform_2(%arg0: i32, %arg1: i32) -> (i32, i32, i32) {
    %c0_i32 = arith.constant 0 : i32
    %c0_i32_0 = arith.constant 0 : i32
    %c0_i32_1 = arith.constant 0 : i32
    return %arg0, %c0_i32, %c0_i32_0 : i32, i32, i32
  }
  func.func @transform_3(%arg0: i32, %arg1: i32) -> (i32, i32, i32) {
    %c0_i32 = arith.constant 0 : i32
    %c0_i32_0 = arith.constant 0 : i32
    %c0_i32_1 = arith.constant 0 : i32
    return %arg0, %c0_i32, %c0_i32_0 : i32, i32, i32
  }
}

</mosaic_0001>

<bundles_post_ra>
// kernel: tpu_custom_call.1
= control target key start
LH: loop header
LB: loop body
LE: loop exit
PB: predicated region body
PF: predicated region fallthrough
CT: control target
= control target key end

     0   :  { %s522_s12 = smov 0   ;;  %s524_s13 = smov 0   ;;  %s576_s0 = inlined_call_operand.vmem [shape: f32[16,32], index: 0, kind: input, shape index: {}]   ;;  %s577_s1 = inlined_call_operand.vmem [shape: s32[16,1], index: 1, kind: input, shape index: {}]   ;;  %s578_s2 = inlined_call_operand.vmem [shape: f32[2,1,1], index: 2, kind: output, shape index: {0}]   ;;  %s579_s3 = inlined_call_operand.vmem [shape: f32[2,1,1], index: 3, kind: output, shape index: {1}]  }
   0x1   :  { %s526_s14 = smov 0  }
   0x2 LB: > { %s26_s15 = sadd.s32 1, %s494_s13  ;;  %p425_p0 = scmp.ge.s32.totalorder %s498_s14, 1  ;;  %s498_s14 = sphi %s526_s14, %s14_s14   ;;  %s494_s13 = sphi %s524_s13, %s581_s13   ;;  %s490_s12 = sphi %s522_s12, %s580_s12  }
   0x3   : > { %p28_p1 = scmp.ge.s32.totalorder %s26_s15, 2  ;;  %p184_p2 = scmp.lt.s32.totalorder %s498_s14, 3 }
   0x5   : > { %s583_s15 = smov (%p28_p1, %s26_s15), 0  ;;  %p185_p3 = pnand %p425_p0, %p184_p2 }
   0x6   : > { %p219_p4 = scmp.lt.s32.totalorder (!%p185_p3), %s490_s12, 1  ;;  %s434_s16 = sshll.u32 (!%p185_p3), %s490_s12, 3  ;;  %v254_v0 = vlaneseq (!%p185_p3)  ;;  %v500_v2 = vmov (!%p185_p3), 0   ;;  %vm262_vm1 = vcmask (!%p185_p3), 261120   ;;  %v501_v26 = vmov (!%p185_p3), 0.0  }
   0x7   : > { %188 = sbr.rel (%p185_p3) target bundleno = 695 (0x2b7), region = 28  ;;  %v256_v1 = vstv (!%p185_p3), %s434_s16  ;;  %468 = vset.pattern.permute.xlu1 (!%p185_p3), %v500_v2  ;;  %469 = vset.pattern.permute.xlu0 (!%p185_p3), %v500_v2  ;;  %vm299_vm3 = vcmask (!%p185_p3), 7168   ;;  %vm248_vm4 = vcmask (!%p185_p3), 0  }
   0x8   : > { %v255_v3 = vshrl.u32 (!%p185_p3), %v254_v0, 7  ;;  %v276_v9 = vand.u32 (!%p185_p3), 127, %v254_v0 }
   0xa   : > { %v257_v4 = vadd.s32 (!%p185_p3), %v256_v1, %v255_v3 }
   0xc   : > { %vm258_vm0 = vcmp.lt.s32.totalorder (!%p185_p3), %v257_v4, 16 }
   0xd   : > { %v435_v27 = vsel (!%p185_p3), %vm258_vm0, 1.0, %v501_v26 }
   0xe   : > { %s585_s12 = smov (!%p219_p4, %s490_s12), 1 }
   0xf   : > { %s222_s17 = scalar_select %p219_p4, %s585_s12, 1 }
  0x10   : > { %s240_s27 = scalar_lea.vmem %s578_s2, %s585_s12  ;;  %s243_s30 = scalar_lea.vmem %s579_s3, %s585_s12 }
  0x11   : > { %s429_s18 = sshll.u32 %s222_s17, 3  ;;  %249 = vst.msk [vmem:[%s240_s27] sm:$0x1] %vm248_vm4, %v501_v26  ;;  %250 = vst.msk [vmem:[%s243_s30] sm:$0x1] %vm248_vm4, %v501_v26 }
  0x12   : > { %s224_s21 = scalar_lea.vmem %s576_s0, %s429_s18  ;;  %s234_s24 = scalar_lea.vmem %s577_s1, %s429_s18 }
  0x13   : > { %v251_v5 = vld [vmem:[%s224_s21] sm:$0xff] }
  0x14   : > { %v274_v6 = vld [vmem:[%s234_s24] sm:$0xff]  ;;  %v261_v7 = vsel %vm258_vm0, %v251_v5, 0.0 }
  0x15   : > { %278 = vperm.xlu1 %468, %v274_v6   ;;  %v263_v8 = vsel %vm262_vm1, %v261_v7, -inf }
  0x16   : > { %264 = vmax.xlane.f32.xlu0 %v263_v8 }
  0x18   : > { %v297_v45 = vld [vmem:[%s240_s27] sm:$0x1] }
  0x19   : > { %v314_v55 = vld [vmem:[%s243_s30] sm:$0x1] }
  0x94   : > { %v279_v10 = vpop.permute.xlu1 %278 }
  0x95   : > { %vm280_vm2 = vcmp.eq.s32.totalorder %v276_v9, %v279_v10 }
  0x96   : > { %v281_v11 = vsel %vm280_vm2, %v261_v7, 0.0 }
  0x97   : > { %v282_v12 = vsel %vm262_vm1, %v281_v11, 0.0 }
  0x98   : > { %283 = vadd.xlane.f32.xlu1 %v282_v12 }
  0xa3   : > { %v265_v13 = vpop.xlane.xlu0 %264 }
  0xa4   : > { %v266_v14 = vsub.f32 %v261_v7, %v265_v13 }
  0xa6   : > { %v267_v15 = vmul.f32 1.442695, %v266_v14 }
  0xa8   : > { %470 = vpow2.f32 %v267_v15 }
  0xb2   : > { %v471_v16 = vpop.eup %470 }
  0xb3   : > { %v269_v17 = vsel %vm262_vm1, %v471_v16, 0.0 }
  0xb4   : > { %270 = vadd.xlane.f32.xlu0 %v269_v17 }
 0x125   : > { %v284_v23 = vpop.xlane.xlu1 %283 }
 0x141   : > { %v271_v18 = vpop.xlane.xlu0 %270 }
 0x142   : > { %472 = vlog2.f32 %v271_v18  ;;  %v287_v19 = vmul.f32 1e-10, %v271_v18 }
 0x144   : > { %v288_v20 = vadd.f32 %v471_v16, %v287_v19 }
 0x146   : > { %474 = vlog2.f32 %v288_v20 }
 0x14c   : > { %v473_v21 = vpop.eup %472 }
 0x14d   : > { %v273_v22 = vmul.f32 0.6931472, %v473_v21 }
 0x14f   : > { %v285_v24 = vadd.f32 %v273_v22, %v265_v13  ;;  %v294_v33 = vmul.f32 32.0, %v273_v22 }
 0x150   : > { %v475_v25 = vpop.eup %474 }
 0x151   : > { %v286_v28 = vsub.f32 %v285_v24, %v284_v23  ;;  %v290_v29 = vmul.f32 0.6931472, %v475_v25 }
 0x153   : > { %v291_v30 = vsel %vm262_vm1, %v290_v29, 0.0  ;;  %v298_v31 = vmul.f32 %v435_v27, %v286_v28 }
 0x154   : > { %292 = vadd.xlane.f32.xlu0 %v291_v30 }
 0x155   : > { %v300_v32 = vsel %vm299_vm3, %v298_v31, 0.0 }
 0x158   : > { %301 = vadd.xlane.f32.xlu0 %v300_v32 }
 0x1e1   : > { %v293_v34 = vpop.xlane.xlu0 %292 }
 0x1e2   : > { %v295_v35 = vsub.f32 %v293_v34, %v294_v33 }
 0x1e4   : > { %v315_v36 = vmul.f32 %v435_v27, %v295_v35 }
 0x1e5   : > { %v302_v37 = vpop.xlane.xlu0 %301 }
 0x1e6   : > { %v303_v38 = vrot.slane %v302_v37, 4  ;;  %v316_v39 = vsel %vm299_vm3, %v315_v36, 0.0 }
 0x1e7   : > { %317 = vadd.xlane.f32.xlu0 %v316_v39 }
 0x1e8   : > { %v304_v40 = vadd.f32 %v303_v38, %v302_v37 }
 0x1ea   : > { %v305_v41 = vrot.slane %v304_v40, 2 }
 0x1ec   : > { %v306_v42 = vadd.f32 %v305_v41, %v304_v40 }
 0x1ee   : > { %v307_v43 = vrot.slane %v306_v42, 1 }
 0x1f0   : > { %v308_v44 = vadd.f32 %v307_v43, %v306_v42 }
 0x1f2   : > { %438 = vpush %v308_v44 }
 0x223   : > { %s439_s4 = spop %438 }
 0x224   : > { %v310_v46 = vstv %s439_s4 }
 0x225   : > { %v311_v47 = vadd.f32 %v310_v46, %v297_v45 }
 0x227   : > { %313 = vst.msk [vmem:[%s240_s27] sm:$0x1] %vm248_vm4, %v311_v47 }
 0x274   : > { %v318_v48 = vpop.xlane.xlu0 %317 }
 0x275   : > { %v319_v49 = vrot.slane %v318_v48, 4 }
 0x277   : > { %v320_v50 = vadd.f32 %v319_v49, %v318_v48 }
 0x279   : > { %v321_v51 = vrot.slane %v320_v50, 2 }
 0x27b   : > { %v322_v52 = vadd.f32 %v321_v51, %v320_v50 }
 0x27d   : > { %v323_v53 = vrot.slane %v322_v52, 1 }
 0x27f   : > { %v324_v54 = vadd.f32 %v323_v53, %v322_v52 }
 0x281   : > { %440 = vpush %v324_v54 }
 0x2b2   : > { %s441_s5 = spop %440 }
 0x2b3   : > { %v326_v56 = vstv %s441_s5 }
 0x2b4   : > { %v327_v57 = vadd.f32 %v326_v56, %v314_v55 }
 0x2b6   : > { %328 = vst.msk [vmem:[%s243_s30] sm:$0x1] %vm248_vm4, %v327_v57 }
 0x2b7 PF: > { %s14_s14 = sadd.s32 1, %s498_s14   ;;  %s580_s12 = smov %s494_s13 }
 0x2b8   : > { %p11_p5 = scmp.ge.s32.totalorder %s14_s14, 4   ;;  %s581_s13 = smov %s583_s15 }
 0x2ba   :  { %13 = sbr.rel (!%p11_p5) target bundleno = 2 (0x2), region = 77 }

</bundles_post_ra>
